<compile_context>
chip_gen: v7x
topology: tpu7x:2x2x1
jax: 0.10.0
libtpu: 0.0.40
codegen_flags: <defaults>
</compile_context>

<pallas_src>
import jax
import jax.numpy as jnp
from jax import lax
from jax.experimental import pallas as pl
from jax.experimental.pallas import tpu as pltpu


def _round_up(x, m):
    return ((x + m - 1) // m) * m


def _choose_tm(m):
    """Pick an MXU/sublane-friendly row tile that divides m (no row padding)."""
    for cand in (256, 128, 64, 32, 16, 8):
        if m >= cand and m % cand == 0:
            return cand
    # Full-extent block: exempt from the (8,128) divisibility rule.
    return m


def _siamese_embed_kernel(x1_ref, x2_ref, w_ref, b_ref, o1_ref, o2_ref):
    """One grid step embeds a tile of rows from BOTH branches with resident W."""
    w = w_ref[...]                                  # bf16 weights, DMA'd once
    b = b_ref[...]                                  # f32 bias row (1, d_pad)

    def embed(x_ref, o_ref):
        x = x_ref[...].astype(jnp.bfloat16)         # cast on the loaded tile
        y = jnp.dot(x, w, preferred_element_type=jnp.float32) + b
        sq = jnp.sum(y * y, axis=-1, keepdims=True)
        # F.normalize(p=2, dim=1, eps=1e-12): y / max(||y||, eps)
        #   == y * rsqrt(max(||y||^2, eps^2))       (rsqrt goes to the EUP slot)
        inv = lax.rsqrt(jnp.maximum(sq, 1e-24))
        o_ref[...] = (y * inv).astype(o_ref.dtype)

    embed(x1_ref, o1_ref)
    embed(x2_ref, o2_ref)


def prepare_embedding_params(w, b):
    """Pad/cast the shared Siamese weights ONCE, outside the per-call path."""
    k, d = w.shape
    d_pad = _round_up(d, 128)                       # lane-dense, unmasked stores
    w_p = jnp.pad(w, ((0, 0), (0, d_pad - d))).astype(jnp.bfloat16)
    b_p = jnp.pad(b.astype(jnp.float32), (0, d_pad - d)).reshape(1, d_pad)
    return w_p, b_p, d


def siamese_forward(x1, x2, w_p, b_p, d):
    """SiameseNetwork.forward: shared embedding model applied to both inputs."""
    n = x1.shape[0]
    x1_flat = x1.reshape(n, -1)                     # row-major == torch.flatten
    x2_flat = x2.reshape(n, -1)
    k = x1_flat.shape[1]
    d_pad = w_p.shape[1]

    tm = _choose_tm(n)
    grid = (n // tm,)

    e1, e2 = pl.pallas_call(
        _siamese_embed_kernel,
        out_shape=(
            jax.ShapeDtypeStruct((n, d_pad), jnp.float32),
            jax.ShapeDtypeStruct((n, d_pad), jnp.float32),
        ),
        grid=grid,
        in_specs=[
            pl.BlockSpec((tm, k), lambda i: (i, 0)),      # x1 row tiles (f32)
            pl.BlockSpec((tm, k), lambda i: (i, 0)),      # x2 row tiles (f32)
            pl.BlockSpec((k, d_pad), lambda i: (0, 0)),   # W: resident, 1 DMA
            pl.BlockSpec((1, d_pad), lambda i: (0, 0)),   # bias: resident
        ],
        out_specs=(
            pl.BlockSpec((tm, d_pad), lambda i: (i, 0)),
            pl.BlockSpec((tm, d_pad), lambda i: (i, 0)),
        ),
        compiler_params=pltpu.CompilerParams(
            dimension_semantics=("parallel",)),
    )(x1_flat, x2_flat, w_p, b_p)

    # Slice away the embedding-dim padding (no-op view when d == d_pad).
    return e1[:, :d], e2[:, :d]


if __name__ == "__main__":
    # Small shapes consistent with the module's NCHW image inputs.
    N, C, H, W = 2, 4, 16, 16
    EMB = 32
    K = C * H * W

    key = jax.random.PRNGKey(0)
    k1, k2, k3, k4 = jax.random.split(key, 4)

    x1 = jax.random.normal(k1, (N, C, H, W), dtype=jnp.float32)
    x2 = jax.random.normal(k2, (N, C, H, W), dtype=jnp.float32)

    # Deterministic synthetic embedding weights (shared between both branches,
    # as in a Siamese network).
    w_emb = jax.random.normal(k3, (K, EMB), dtype=jnp.float32) * 0.02
    b_emb = jax.random.normal(k4, (EMB,), dtype=jnp.float32) * 0.01

    # One-time weight prep (pad + bf16 cast), outside the per-forward path.
    w_p, b_p, d = prepare_embedding_params(w_emb, b_emb)

    e1, e2 = siamese_forward(x1, x2, w_p, b_p, d)
    jax.block_until_ready((e1, e2))

    # Reference check in plain f32 JAX.
    def ref_embed(x):
        y = x.reshape(x.shape[0], -1) @ w_emb + b_emb
        nrm = jnp.sqrt(jnp.sum(y * y, axis=-1, keepdims=True))
        return y / jnp.maximum(nrm, 1e-12)

    r1, r2 = ref_embed(x1), ref_embed(x2)
    assert e1.shape == (N, EMB) and e2.shape == (N, EMB)
    # bf16 MXU operands (f32 accumulation): tolerance looser than pure f32.
    assert jnp.allclose(e1, r1, atol=2e-2, rtol=2e-2)
    assert jnp.allclose(e2, r2, atol=2e-2, rtol=2e-2)
    # Embeddings must be unit L2-norm.
    assert jnp.allclose(jnp.linalg.norm(e1, axis=-1), 1.0, atol=1e-3)
    assert jnp.allclose(jnp.linalg.norm(e2, axis=-1), 1.0, atol=1e-3)

    print("KERNEL_OK")
</pallas_src>

<mosaic_0001>
module attributes {stable_mosaic.version = 11 : i64} {
  func.func @_siamese_embed_kernel(%arg0: i32, %arg1: memref<2x1024xf32, #tpu.memory_space<vmem>>, %arg2: memref<2x1024xf32, #tpu.memory_space<vmem>>, %arg3: memref<1024x128xbf16, #tpu.memory_space<vmem>>, %arg4: memref<1x128xf32, #tpu.memory_space<vmem>>, %arg5: memref<2x128xf32, #tpu.memory_space<vmem>>, %arg6: memref<2x128xf32, #tpu.memory_space<vmem>>) attributes {dimension_semantics = [#tpu.dimension_semantics<parallel>], iteration_bounds = array<i64: 1>, scalar_prefetch = 0 : i64, scratch_operands = 0 : i64, tpu.core_type = #tpu.core_type<tc>, window_params = [{transform_indices = @transform_0, window_bounds = array<i64: 2, 1024>}, {transform_indices = @transform_1, window_bounds = array<i64: 2, 1024>}, {pipeline_mode = #tpu.pipeline_mode<synchronous>, transform_indices = @transform_2, window_bounds = array<i64: 1024, 128>}, {pipeline_mode = #tpu.pipeline_mode<synchronous>, transform_indices = @transform_3, window_bounds = array<i64: 1, 128>}, {transform_indices = @transform_4, window_bounds = array<i64: 2, 128>}, {transform_indices = @transform_5, window_bounds = array<i64: 2, 128>}]} {
    %c0 = arith.constant 0 : index
    %c0_0 = arith.constant 0 : index
    %0 = vector.load %arg3[%c0, %c0_0] : memref<1024x128xbf16, #tpu.memory_space<vmem>>, vector<1024x128xbf16>
    %c0_1 = arith.constant 0 : index
    %c0_2 = arith.constant 0 : index
    %1 = vector.load %arg4[%c0_1, %c0_2] : memref<1x128xf32, #tpu.memory_space<vmem>>, vector<1x128xf32>
    %c0_3 = arith.constant 0 : index
    %c0_4 = arith.constant 0 : index
    %2 = vector.load %arg1[%c0_3, %c0_4] : memref<2x1024xf32, #tpu.memory_space<vmem>>, vector<2x1024xf32>
    %3 = arith.truncf %2 : vector<2x1024xf32> to vector<2x1024xbf16>
    %cst = arith.constant dense<0.000000e+00> : vector<2x128xf32>
    %4 = tpu.matmul %3, %0, %cst {dimension_numbers = #tpu.dot_dimension_numbers<[1], [0], [0], [1], [0, 0, 1, 1], [], []>} : vector<2x1024xbf16>, vector<1024x128xbf16>, vector<2x128xf32> -> vector<2x128xf32>
    %5 = vector.broadcast %1 : vector<1x128xf32> to vector<2x128xf32>
    %6 = arith.addf %4, %5 : vector<2x128xf32>
    %7 = arith.mulf %6, %6 : vector<2x128xf32>
    %cst_5 = arith.constant dense<0.000000e+00> : vector<2xf32>
    %8 = vector.multi_reduction <add>, %7, %cst_5 [1] : vector<2x128xf32> to vector<2xf32>
    %9 = vector.shape_cast %8 : vector<2xf32> to vector<2x1xf32>
    %cst_6 = arith.constant 1.000000e-24 : f32
    %10 = vector.broadcast %cst_6 : f32 to vector<2x1xf32>
    %11 = arith.maximumf %9, %10 : vector<2x1xf32>
    %12 = math.rsqrt %11 : vector<2x1xf32>
    %13 = vector.broadcast %12 : vector<2x1xf32> to vector<2x128xf32>
    %14 = arith.mulf %6, %13 : vector<2x128xf32>
    %c0_7 = arith.constant 0 : index
    %c0_8 = arith.constant 0 : index
    %15 = vector.load %arg5[%c0_7, %c0_8] : memref<2x128xf32, #tpu.memory_space<vmem>>, vector<2x128xf32>
    tpu.vector_store %arg5[%c0_7, %c0_8], %14 {strides = array<i32>} : memref<2x128xf32, #tpu.memory_space<vmem>>, vector<2x128xf32>,
    %c0_9 = arith.constant 0 : index
    %c0_10 = arith.constant 0 : index
    %16 = vector.load %arg2[%c0_9, %c0_10] : memref<2x1024xf32, #tpu.memory_space<vmem>>, vector<2x1024xf32>
    %17 = arith.truncf %16 : vector<2x1024xf32> to vector<2x1024xbf16>
    %cst_11 = arith.constant dense<0.000000e+00> : vector<2x128xf32>
    %18 = tpu.matmul %17, %0, %cst_11 {dimension_numbers = #tpu.dot_dimension_numbers<[1], [0], [0], [1], [0, 0, 1, 1], [], []>} : vector<2x1024xbf16>, vector<1024x128xbf16>, vector<2x128xf32> -> vector<2x128xf32>
    %19 = vector.broadcast %1 : vector<1x128xf32> to vector<2x128xf32>
    %20 = arith.addf %18, %19 : vector<2x128xf32>
    %21 = arith.mulf %20, %20 : vector<2x128xf32>
    %cst_12 = arith.constant dense<0.000000e+00> : vector<2xf32>
    %22 = vector.multi_reduction <add>, %21, %cst_12 [1] : vector<2x128xf32> to vector<2xf32>
    %23 = vector.shape_cast %22 : vector<2xf32> to vector<2x1xf32>
    %cst_13 = arith.constant 1.000000e-24 : f32
    %24 = vector.broadcast %cst_13 : f32 to vector<2x1xf32>
    %25 = arith.maximumf %23, %24 : vector<2x1xf32>
    %26 = math.rsqrt %25 : vector<2x1xf32>
    %27 = vector.broadcast %26 : vector<2x1xf32> to vector<2x128xf32>
    %28 = arith.mulf %20, %27 : vector<2x128xf32>
    %c0_14 = arith.constant 0 : index
    %c0_15 = arith.constant 0 : index
    %29 = vector.load %arg6[%c0_14, %c0_15] : memref<2x128xf32, #tpu.memory_space<vmem>>, vector<2x128xf32>
    tpu.vector_store %arg6[%c0_14, %c0_15], %28 {strides = array<i32>} : memref<2x128xf32, #tpu.memory_space<vmem>>, vector<2x128xf32>,
    return
  }
  func.func @transform_0(%arg0: i32) -> (i32, i32) {
    %c0_i32 = arith.constant 0 : i32
    %c0_i32_0 = arith.constant 0 : i32
    return %arg0, %c0_i32 : i32, i32
  }
  func.func @transform_1(%arg0: i32) -> (i32, i32) {
    %c0_i32 = arith.constant 0 : i32
    %c0_i32_0 = arith.constant 0 : i32
    return %arg0, %c0_i32 : i32, i32
  }
  func.func @transform_2(%arg0: i32) -> (i32, i32) {
    %c0_i32 = arith.constant 0 : i32
    %c0_i32_0 = arith.constant 0 : i32
    %c0_i32_1 = arith.constant 0 : i32
    return %c0_i32, %c0_i32_0 : i32, i32
  }
  func.func @transform_3(%arg0: i32) -> (i32, i32) {
    %c0_i32 = arith.constant 0 : i32
    %c0_i32_0 = arith.constant 0 : i32
    %c0_i32_1 = arith.constant 0 : i32
    return %c0_i32, %c0_i32_0 : i32, i32
  }
  func.func @transform_4(%arg0: i32) -> (i32, i32) {
    %c0_i32 = arith.constant 0 : i32
    %c0_i32_0 = arith.constant 0 : i32
    return %arg0, %c0_i32 : i32, i32
  }
  func.func @transform_5(%arg0: i32) -> (i32, i32) {
    %c0_i32 = arith.constant 0 : i32
    %c0_i32_0 = arith.constant 0 : i32
    return %arg0, %c0_i32 : i32, i32
  }
}

</mosaic_0001>

<bundles_post_ra>
// kernel: tpu_custom_call.1
= control target key start
LH: loop header
LB: loop body
LE: loop exit
PB: predicated region body
PF: predicated region fallthrough
CT: control target
= control target key end

     0   :  { %11 = vsyncpa [#allocation3], 0  ;;  %s1873_s0 = inlined_call_operand.hbm [shape: f32[2,1024], index: 0, kind: input, shape index: {}]   ;;  %s1874_s1 = inlined_call_operand.hbm [shape: f32[2,1024], index: 1, kind: input, shape index: {}]   ;;  %s1875_s2 = inlined_call_operand.hbm [shape: bf16[1024,128], index: 2, kind: input, shape index: {}]   ;;  %s1876_s3 = inlined_call_operand.vmem [shape: f32[1,128], index: 3, kind: input, shape index: {}]   ;;  %s1877_s4 = inlined_call_operand.hbm [shape: f32[2,128], index: 4, kind: output, shape index: {0}]   ;;  %s1878_s5 = inlined_call_operand.hbm [shape: f32[2,128], index: 5, kind: output, shape index: {1}]  }
   0x1   :  { %12 = vsyncpa [#allocation6], 0 }
   0x2   :  { %13 = vsyncpa [#allocation4], 0 }
   0x3   :  { %14 = vsyncpa [#allocation10], 0  ;;  %s1492_s18 = smov [#allocation5]   ;;  %s1493_s20 = smov [#allocation2]  }
   0x4   :  { %s31_s19 = sshll.u32 %s1492_s18, 4  ;;  %s21_s21 = sshll.u32 %s1493_s20, 4  ;;  %s32_s19 = int_to_ptr.vmem [resolvable:$true] %s31_s19  ;;  %s22_s21 = int_to_ptr.vmem [resolvable:$true] %s21_s21 }
   0x5   :  { %s1374_s24 = scalar_lea.hbm %s1874_s1, 256 }
   0x6   :  { %p1375_p0 = scmp.ne.s32.totalorder %s1874_s1, %s1374_s24  ;;  %p1378_p1 = scmp.lt.u32.totalorder %s1374_s24, %s1874_s1 }
   0x8   :  { %p1380_p2 = pnand %p1378_p1, %p1375_p0 }
   0xa   :  { %1383 = shalt.err (!%p1380_p2)
}
   0xb   :  { %s1384_s29 = scalar_lea.vmem %s32_s19, 256  ;;  %p1389_p4 = scmp.lt.s32.totalorder %s32_s19, %s32_s19 }
   0xc   :  { %p1385_p3 = scmp.ne.s32.totalorder %s32_s19, %s1384_s29  ;;  %p1390_p5 = scmp.lt.s32.totalorder %s1384_s29, %s1384_s29 }
   0xe   :  { %p1391_p6 = por %p1390_p5, %p1389_p4 }
  0x10   :  { %p1392_p7 = pnand %p1391_p6, %p1385_p3 }
  0x12   :  { %1395 = shalt.err (!%p1392_p7)
}
  0x13   :  { %34 = dma.hbm_to_vmem [thread:$0]  %s1874_s1, 256, %s32_s19, [#allocation6]  }
  0x14   :  { %s1396_s9 = scalar_lea.hbm %s1873_s0, 256 }
  0x15   :  { %p1397_p8 = scmp.ne.s32.totalorder %s1873_s0, %s1396_s9  ;;  %p1400_p9 = scmp.lt.u32.totalorder %s1396_s9, %s1873_s0 }
  0x17   :  { %p1402_p10 = pnand %p1400_p9, %p1397_p8 }
  0x19   :  { %1405 = shalt.err (!%p1402_p10)
}
  0x1a   :  { %s1406_s14 = scalar_lea.vmem %s22_s21, 256  ;;  %p1411_p12 = scmp.lt.s32.totalorder %s22_s21, %s22_s21 }
  0x1b   :  { %p1407_p11 = scmp.ne.s32.totalorder %s22_s21, %s1406_s14  ;;  %p1412_p13 = scmp.lt.s32.totalorder %s1406_s14, %s1406_s14 }
  0x1d   :  { %p1413_p0 = por %p1412_p13, %p1411_p12 }
  0x1f   :  { %p1414_p1 = pnand %p1413_p0, %p1407_p11 }
  0x21   :  { %1417 = shalt.err (!%p1414_p1)
}
  0x22   :  { %24 = dma.hbm_to_vmem [thread:$0]  %s1873_s0, 256, %s22_s21, [#allocation3]  }
  0x23   :  { %s1494_s16 = smov [#allocation7]   ;;  %s1418_s20 = scalar_lea.hbm %s1875_s2, 8192 }
  0x24   :  { %s40_s17 = sshll.u32 %s1494_s16, 4  ;;  %p1419_p2 = scmp.ne.s32.totalorder %s1875_s2, %s1418_s20  ;;  %s41_s17 = int_to_ptr.vmem [resolvable:$true] %s40_s17 }
  0x25   :  { %p1422_p3 = scmp.lt.u32.totalorder %s1418_s20, %s1875_s2 }
  0x27   :  { %p1424_p4 = pnand %p1422_p3, %p1419_p2 }
  0x29   :  { %1427 = shalt.err (!%p1424_p4)
}
  0x2a   :  { %s1428_s26 = scalar_lea.vmem %s41_s17, 8192  ;;  %p1433_p6 = scmp.lt.s32.totalorder %s41_s17, %s41_s17 }
  0x2b   :  { %p1429_p5 = scmp.ne.s32.totalorder %s41_s17, %s1428_s26  ;;  %p1434_p7 = scmp.lt.s32.totalorder %s1428_s26, %s1428_s26 }
  0x2d   :  { %p1435_p8 = por %p1434_p7, %p1433_p6 }
  0x2f   :  { %p1436_p9 = pnand %p1435_p8, %p1429_p5 }
  0x31   :  { %1439 = shalt.err (!%p1436_p9)
}
  0x32   :  { %s1495_s0 = smov 64   ;;  %s1496_s21 = smov 4  }
  0x33   :  { %46 = dma.hbm_to_vmem [thread:$0]  %s1875_s2, 8192, %s41_s17, [#allocation6], %s1495_s0, %s1495_s0, %s1496_s21  }
  0x34   :  { %1484 = dma.done.wait [#allocation3], 256  }
  0x35   :  { %1485 = vsyncadd [#allocation3], 4294967040 }
  0x36   :  { %1486 = dma.done.wait [#allocation6], 8448  }
  0x37   :  { %1487 = vsyncadd [#allocation6], 4294958848  ;;  %v1566_v0 = vld [vmem:[#allocation7 + $0x40] sm:$0xff]   ;;  %v1577_v4 = vld [vmem:[#allocation7 + $0x48] sm:$0xff]   ;;  %v1497_v22 = vmov 1983009808   ;;  %v196_v24 = vlaneseq }
  0x38   :  { %v1568_v1 = vld [vmem:[#allocation7 + $0xc0] sm:$0xff]   ;;  %1118 = vmatprep.subr.bf16.mxu0 %v1566_v0  ;;  %v1580_v5 = vld [vmem:[#allocation7 + $0xc8] sm:$0xff]   ;;  %v1589_v8 = vld [vmem:[#allocation7 + $0x50] sm:$0xff]   ;;  %v194_v23 = vunpack.c.l.s4 %v1497_v22  ;;  %vm793_vm0 = vcmask 1041408  }
  0x39   :  { %v1571_v2 = vld [vmem:[#allocation7] sm:$0xff]   ;;  %1140 = vmatprep.subr.bf16.mxu1 %v1568_v1  ;;  %v1583_v6 = vld [vmem:[#allocation7 + $0x8] sm:$0xff]   ;;  %v1592_v9 = vld [vmem:[#allocation7 + $0xd0] sm:$0xff]   ;;  %v197_v30 = vshrl.u32 %v196_v24, 7 }
  0x3a   :  { %v1574_v3 = vld [vmem:[#allocation7 + $0x80] sm:$0xff]   ;;  %1119 = vmatpush3.bf16.msra.mxu0 %v1571_v2  ;;  %v1586_v7 = vld [vmem:[#allocation7 + $0x88] sm:$0xff]   ;;  %v1595_v10 = vld [vmem:[#allocation7 + $0x10] sm:$0xff]   ;;  %v195_v29 = vunpack.c.0.s8 %v194_v23 }
  0x3b   :  { %1141 = vmatpush3.bf16.msra.mxu1 %v1574_v3  ;;  %1120 = vmatprep.subr.bf16.mxu0 %v1577_v4  ;;  %v1598_v11 = vld [vmem:[#allocation7 + $0x90] sm:$0xff]   ;;  %v1601_v12 = vld [vmem:[#allocation7 + $0x58] sm:$0xff]   ;;  %v1613_v16 = vld [vmem:[#allocation7 + $0x60] sm:$0xff]  }
  0x3c   :  { %1142 = vmatprep.subr.bf16.mxu1 %v1580_v5  ;;  %v1604_v13 = vld [vmem:[#allocation7 + $0xd8] sm:$0xff]   ;;  %v1616_v17 = vld [vmem:[#allocation7 + $0xe0] sm:$0xff]   ;;  %v1625_v20 = vld [vmem:[#allocation7 + $0x68] sm:$0xff]   ;;  %v1654_v35 = vsub.s32 %v195_v29, %v197_v30 }
  0x3d   :  { %v1607_v14 = vld [vmem:[#allocation7 + $0x18] sm:$0xff]   ;;  %v1619_v18 = vld [vmem:[#allocation7 + $0x20] sm:$0xff]   ;;  %v1628_v21 = vld [vmem:[#allocation7 + $0xe8] sm:$0xff]  }
  0x3e   :  { %1121 = vmatpush3.bf16.msra.mxu0 %v1583_v6  ;;  %v1610_v15 = vld [vmem:[#allocation7 + $0x98] sm:$0xff]   ;;  %v1622_v19 = vld [vmem:[#allocation7 + $0xa0] sm:$0xff]   ;;  %v1631_v25 = vld [vmem:[#allocation7 + $0x28] sm:$0xff]  }
  0x3f   :  { %1143 = vmatpush3.bf16.msra.mxu1 %v1586_v7  ;;  %1122 = vmatprep.subr.bf16.mxu0 %v1589_v8  ;;  %v1634_v26 = vld [vmem:[#allocation7 + $0xa8] sm:$0xff]   ;;  %v1637_v27 = vld [vmem:[#allocation7 + $0x70] sm:$0xff]   ;;  %v1649_v33 = vld [vmem:[#allocation7 + $0x78] sm:$0xff]  }
  0x40   :  { %1144 = vmatprep.subr.bf16.mxu1 %v1592_v9  ;;  %v1640_v28 = vld [vmem:[#allocation7 + $0xf0] sm:$0xff]   ;;  %v1652_v34 = vld [vmem:[#allocation7 + $0xf8] sm:$0xff]   ;;  %v188_v38 = vld [vmem:[#allocation2] sm:$0xff] }
  0x41   :  { %v1643_v31 = vld [vmem:[#allocation7 + $0x30] sm:$0xff]   ;;  %v1657_v36 = vld [vmem:[#allocation7 + $0x38] sm:$0xff]   ;;  %v199_v39 = vrot.slane %v188_v38, %v1654_v35  ;;  %v192_v40 = vcombine.high %v188_v38, %v188_v38  ;;  %v1665_v41 = vld [vmem:[#allocation7 + $0x140] sm:$0xff]  }
  0x42   :  { %1123 = vmatpush3.bf16.msra.mxu0 %v1595_v10  ;;  %v1646_v32 = vld [vmem:[#allocation7 + $0xb0] sm:$0xff]   ;;  %v1660_v37 = vld [vmem:[#allocation7 + $0xb8] sm:$0xff]   ;;  %v1667_v42 = vld [vmem:[#allocation7 + $0x1c0] sm:$0xff]  }
  0x43   :  { %1145 = vmatpush3.bf16.msra.mxu1 %v1598_v11  ;;  %1124 = vmatprep.subr.bf16.mxu0 %v1601_v12  ;;  %v207_v43 = vcombine.high %v199_v39, %v199_v39  ;;  %v206_v44 = vrot.slane %v192_v40, %v1654_v35  ;;  %v234_v45 = vpack.c.bf16 %v199_v39, %v199_v39  ;;  %v1672_v48 = vld [vmem:[#allocation7 + $0x100] sm:$0xff]   ;;  %v1674_v50 = vld [vmem:[#allocation7 + $0x148] sm:$0xff]   ;;  %v1684_v55 = vld [vmem:[#allocation7 + $0x150] sm:$0xff]  }
  0x44   :  { %1146 = vmatprep.subr.bf16.mxu1 %v1604_v13  ;;  %v1676_v52 = vld [vmem:[#allocation7 + $0x180] sm:$0xff]   ;;  %v1678_v53 = vld [vmem:[#allocation7 + $0x1c8] sm:$0xff]   ;;  %v1690_v57 = vld [vmem:[#allocation7 + $0x1d0] sm:$0xff]  }
  0x45   :  { %v235_v46 = vpack.c.bf16 %v207_v43, %v207_v43  ;;  %v208_v47 = vcombine.high %v206_v44, %v206_v44  ;;  %v236_v49 = vpack.c.bf16 %v206_v44, %v206_v44  ;;  %v1681_v54 = vld [vmem:[#allocation7 + $0x108] sm:$0xff]   ;;  %v1693_v58 = vld [vmem:[#allocation7 + $0x110] sm:$0xff]   ;;  %v1696_v59 = vld [vmem:[#allocation7 + $0x158] sm:$0xff]  }
  0x46   :  { %1125 = vmatpush3.bf16.msra.mxu0 %v1607_v14  ;;  %v1687_v56 = vld [vmem:[#allocation7 + $0x188] sm:$0xff]   ;;  %v1699_v60 = vld [vmem:[#allocation7 + $0x190] sm:$0xff]   ;;  %v1702_v61 = vld [vmem:[#allocation7 + $0x1d8] sm:$0xff]  }
  0x47   :  { %1147 = vmatpush3.bf16.msra.mxu1 %v1610_v15  ;;  %1126 = vmatprep.subr.bf16.mxu0 %v1613_v16  ;;  %v237_v51 = vpack.c.bf16 %v208_v47, %v208_v47  ;;  %v1705_v62 = vld [vmem:[#allocation7 + $0x118] sm:$0xff]   ;;  %v1708_v63 = vld [vmem:[#allocation7 + $0x160] sm:$0xff]   ;;  %v1720_v29 = vld [vmem:[#allocation7 + $0x168] sm:$0xff]  }
  0x48   :  { %1148 = vmatprep.subr.bf16.mxu1 %v1616_v17  ;;  %664 = vmatprep.mubr.bf16.mxu0 %v235_v46  ;;  %1894 = vst [vmem:[#allocation15_spill] sm:$0xff] %v1705_v62  ;;  %1895 = vst [vmem:[#allocation16_spill] sm:$0xff] %v1708_v63  ;;  %v1711_v22 = vld [vmem:[#allocation7 + $0x198] sm:$0xff]   ;;  %v1714_v23 = vld [vmem:[#allocation7 + $0x1e0] sm:$0xff]  }
  0x49   :  { %704 = vmatprep.mubr.bf16.mxu1 %v237_v51  ;;  %1896 = vst [vmem:[#allocation17_spill] sm:$0xff] %v1711_v22  ;;  %1897 = vst [vmem:[#allocation18_spill] sm:$0xff] %v1714_v23  ;;  %v1717_v24 = vld [vmem:[#allocation7 + $0x120] sm:$0xff]   ;;  %v1726_v38 = vld [vmem:[#allocation7 + $0x1e8] sm:$0xff]  }
  0x4a   :  { %1127 = vmatpush3.bf16.msra.mxu0 %v1619_v18  ;;  %1898 = vst [vmem:[#allocation19_spill] sm:$0xff] %v1717_v24  ;;  %1899 = vst [vmem:[#allocation20_spill] sm:$0xff] %v1720_v29  ;;  %v1723_v30 = vld [vmem:[#allocation7 + $0x1a0] sm:$0xff]   ;;  %v1729_v39 = vld [vmem:[#allocation7 + $0x128] sm:$0xff]  }
  0x4b   :  { %1149 = vmatpush3.bf16.msra.mxu1 %v1622_v19  ;;  %1128 = vmatprep.subr.bf16.mxu0 %v1625_v20  ;;  %1900 = vst [vmem:[#allocation21_spill] sm:$0xff] %v1723_v30  ;;  %1901 = vst [vmem:[#allocation22_spill] sm:$0xff] %v1726_v38  ;;  %v1732_v40 = vld [vmem:[#allocation7 + $0x170] sm:$0xff]   ;;  %v1735_v43 = vld [vmem:[#allocation7 + $0x1a8] sm:$0xff]  }
  0x4c   :  { %1150 = vmatprep.subr.bf16.mxu1 %v1628_v21  ;;  %1902 = vst [vmem:[#allocation23_spill] sm:$0xff] %v1729_v39  ;;  %1903 = vst [vmem:[#allocation24_spill] sm:$0xff] %v1732_v40  ;;  %v1738_v44 = vld [vmem:[#allocation7 + $0x1f0] sm:$0xff]   ;;  %v1744_v46 = vld [vmem:[#allocation7 + $0x178] sm:$0xff]  }
  0x4d   :  { %1904 = vst [vmem:[#allocation25_spill] sm:$0xff] %v1735_v43  ;;  %1905 = vst [vmem:[#allocation26_spill] sm:$0xff] %v1738_v44  ;;  %v1747_v47 = vld [vmem:[#allocation7 + $0x1b0] sm:$0xff]   ;;  %v189_v51 = vld [vmem:[#allocation2 + $0x8] sm:$0xff] }
  0x4e   :  { %1129 = vmatpush3.bf16.msra.mxu0 %v1631_v25  ;;  %1907 = vst [vmem:[#allocation28_spill] sm:$0xff] %v1744_v46  ;;  %1908 = vst [vmem:[#allocation29_spill] sm:$0xff] %v1747_v47 }
  0x4f   :  { %1151 = vmatpush3.bf16.msra.mxu1 %v1634_v26  ;;  %1130 = vmatprep.subr.bf16.mxu0 %v1637_v27 }
  0x50   :  { %1152 = vmatprep.subr.bf16.mxu1 %v1640_v28 }
  0x52   :  { %1131 = vmatpush3.bf16.msra.mxu0 %v1643_v31 }
  0x53   :  { %1153 = vmatpush3.bf16.msra.mxu1 %v1646_v32  ;;  %1132 = vmatprep.subr.bf16.mxu0 %v1649_v33 }
  0x54   :  { %1154 = vmatprep.subr.bf16.mxu1 %v1652_v34 }
  0x56   :  { %1133 = vmatpush3.bf16.msra.mxu0 %v1657_v36 }
  0x57   :  { %1155 = vmatpush3.bf16.msra.mxu1 %v1660_v37  ;;  %1162 = vmatprep.subr.bf16.mxu0 %v1665_v41 }
  0x58   :  { %1184 = vmatprep.subr.bf16.mxu1 %v1667_v42 }
  0x59   :  { %665 = vmatmul.mubr.bf16.vlgmr.msra.gmra.mrb[0].mxu0 %v234_v45  ;;  %v1741_v45 = vld [vmem:[#allocation7 + $0x130] sm:$0xff]  }
  0x5a   :  { %1163 = vmatpush3.bf16.msra.mxu0 %v1672_v48  ;;  %705 = vmatmul.mubr.bf16.vlgmr.msra.gmra.mrb[0].mxu1 %v236_v49  ;;  %1906 = vst [vmem:[#allocation27_spill] sm:$0xff] %v1741_v45  ;;  %v1750_v49 = vld [vmem:[#allocation7 + $0x1f8] sm:$0xff]  }
  0x5b   :  { %1164 = vmatprep.subr.bf16.mxu0 %v1674_v50  ;;  %1185 = vmatpush3.bf16.msra.mxu1 %v1676_v52 }
  0x5c   :  { %1186 = vmatprep.subr.bf16.mxu1 %v1678_v53 }
  0x5e   :  { %1165 = vmatpush3.bf16.msra.mxu0 %v1681_v54 }
  0x5f   :  { %1166 = vmatprep.subr.bf16.mxu0 %v1684_v55  ;;  %1187 = vmatpush3.bf16.msra.mxu1 %v1687_v56 }
  0x60   :  { %1188 = vmatprep.subr.bf16.mxu1 %v1690_v57 }
  0x62   :  { %1167 = vmatpush3.bf16.msra.mxu0 %v1693_v58 }
  0x63   :  { %1168 = vmatprep.subr.bf16.mxu0 %v1696_v59  ;;  %1189 = vmatpush3.bf16.msra.mxu1 %v1699_v60 }
  0x64   :  { %1190 = vmatprep.subr.bf16.mxu1 %v1702_v61 }
  0x66   :  { %1169 = vmatpush3.bf16.msra.mxu0 %v1705_v62 }
  0x67   :  { %1170 = vmatprep.subr.bf16.mxu0 %v1708_v63  ;;  %1191 = vmatpush3.bf16.msra.mxu1 %v1711_v22 }
  0x68   :  { %1192 = vmatprep.subr.bf16.mxu1 %v1714_v23 }
  0x6a   :  { %1171 = vmatpush3.bf16.msra.mxu0 %v1717_v24 }
  0x6b   :  { %1172 = vmatprep.subr.bf16.mxu0 %v1720_v29  ;;  %1193 = vmatpush3.bf16.msra.mxu1 %v1723_v30  ;;  %v1753_v30 = vld [vmem:[#allocation7 + $0x138] sm:$0xff]   ;;  %v209_v29 = vcombine.high %v189_v51, %v189_v51 }
  0x6c   :  { %1194 = vmatprep.subr.bf16.mxu1 %v1726_v38  ;;  %v801_v38 = vld [vmem:[#allocation5] sm:$0xff] }
  0x6d   :  { %v805_v24 = vcombine.high %v801_v38, %v801_v38  ;;  %v223_v23 = vrot.slane %v209_v29, %v1654_v35 }
  0x6e   :  { %1173 = vmatpush3.bf16.msra.mxu0 %v1729_v39  ;;  %v216_v39 = vrot.slane %v189_v51, %v1654_v35 }
  0x6f   :  { %1174 = vmatprep.subr.bf16.mxu0 %v1732_v40  ;;  %1195 = vmatpush3.bf16.msra.mxu1 %v1735_v43  ;;  %v1757_v40 = vrot.slane %v801_v38, %v1654_v35  ;;  %v1768_v51 = vrot.slane %v805_v24, %v1654_v35  ;;  %v240_v63 = vpack.c.bf16 %v223_v23, %v223_v23 }
  0x70   :  { %1196 = vmatprep.subr.bf16.mxu1 %v1738_v44  ;;  %v1761_v44 = vld [vmem:[#allocation7 + $0x1b8] sm:$0xff]   ;;  %v224_v43 = vcombine.high %v216_v39, %v216_v39  ;;  %v238_v22 = vpack.c.bf16 %v216_v39, %v216_v39 }
  0x72   :  { %1175 = vmatpush3.bf16.msra.mxu0 %v1741_v45  ;;  %v820_v45 = vcombine.high %v1757_v40, %v1757_v40  ;;  %v239_v38 = vpack.c.bf16 %v224_v43, %v224_v43 }
  0x73   :  { %1176 = vmatprep.subr.bf16.mxu0 %v1744_v46  ;;  %1197 = vmatpush3.bf16.msra.mxu1 %v1747_v47  ;;  %v225_v46 = vcombine.high %v223_v23, %v223_v23  ;;  %v821_v47 = vcombine.high %v1768_v51, %v1768_v51 }
  0x74   :  { %1198 = vmatprep.subr.bf16.mxu1 %v1750_v49  ;;  %744 = vmatprep.mubr.bf16.mxu0 %v239_v38  ;;  %v848_v62 = vpack.c.bf16 %v820_v45, %v820_v45 }
  0x75   :  { %v241_v29 = vpack.c.bf16 %v225_v46, %v225_v46  ;;  %v850_v24 = vpack.c.bf16 %v821_v47, %v821_v47 }
  0x76   :  { %1177 = vmatpush3.bf16.msra.mxu0 %v1753_v30 }
  0x77   :  { %1206 = vmatprep.subr.bf16.mxu0 %v1566_v0  ;;  %1199 = vmatpush3.bf16.msra.mxu1 %v1761_v44  ;;  %v802_v0 = vld [vmem:[#allocation5 + $0x8] sm:$0xff] }
  0x78   :  { %1228 = vmatprep.subr.bf16.mxu1 %v1568_v1  ;;  %784 = vmatprep.mubr.bf16.mxu1 %v241_v29  ;;  %v822_v1 = vcombine.high %v802_v0, %v802_v0 }
  0x79   :  { %745 = vmatmul.mubr.bf16.vlgmr.msra.gmra.mrb[4].mxu0 %v238_v22 }
  0x7a   :  { %1207 = vmatpush3.bf16.msra.mxu0 %v1571_v2  ;;  %785 = vmatmul.mubr.bf16.vlgmr.msra.gmra.mrb[4].mxu1 %v240_v63  ;;  %v829_v2 = vrot.slane %v802_v0, %v1654_v35 }
  0x7b   :  { %1208 = vmatprep.subr.bf16.mxu0 %v1577_v4  ;;  %1229 = vmatpush3.bf16.msra.mxu1 %v1574_v3  ;;  %v836_v3 = vrot.slane %v822_v1, %v1654_v35 }
  0x7c   :  { %887 = vmatprep.mubr.bf16.mxu0 %v848_v62  ;;  %1230 = vmatprep.subr.bf16.mxu1 %v1580_v5  ;;  %v837_v4 = vcombine.high %v829_v2, %v829_v2 }
  0x7d   :  { %927 = vmatprep.mubr.bf16.mxu1 %v850_v24  ;;  %v838_v5 = vcombine.high %v836_v3, %v836_v3 }
  0x7e   :  { %1209 = vmatpush3.bf16.msra.mxu0 %v1583_v6  ;;  %v847_v6 = vpack.c.bf16 %v1757_v40, %v1757_v40 }
  0x7f   :  { %1210 = vmatprep.subr.bf16.mxu0 %v1589_v8  ;;  %1231 = vmatpush3.bf16.msra.mxu1 %v1586_v7  ;;  %v852_v7 = vpack.c.bf16 %v837_v4, %v837_v4  ;;  %v849_v8 = vpack.c.bf16 %v1768_v51, %v1768_v51 }
  0x80   :  { %1232 = vmatprep.subr.bf16.mxu1 %v1592_v9  ;;  %v854_v9 = vpack.c.bf16 %v838_v5, %v838_v5 }
  0x82   :  { %1211 = vmatpush3.bf16.msra.mxu0 %v1595_v10  ;;  %v1909_v10 = vld [vmem:[#allocation15_spill] sm:$0xff] }
  0x83   :  { %1212 = vmatprep.subr.bf16.mxu0 %v1601_v12  ;;  %1233 = vmatpush3.bf16.msra.mxu1 %v1598_v11  ;;  %v1910_v11 = vld [vmem:[#allocation16_spill] sm:$0xff]  ;;  %v1911_v12 = vld [vmem:[#allocation17_spill] sm:$0xff] }
  0x84   :  { %1234 = vmatprep.subr.bf16.mxu1 %v1604_v13  ;;  %v1912_v13 = vld [vmem:[#allocation18_spill] sm:$0xff] }
  0x86   :  { %1213 = vmatpush3.bf16.msra.mxu0 %v1607_v14  ;;  %v1913_v14 = vld [vmem:[#allocation19_spill] sm:$0xff] }
  0x87   :  { %1214 = vmatprep.subr.bf16.mxu0 %v1613_v16  ;;  %1235 = vmatpush3.bf16.msra.mxu1 %v1610_v15  ;;  %v1914_v15 = vld [vmem:[#allocation20_spill] sm:$0xff]  ;;  %v1915_v16 = vld [vmem:[#allocation21_spill] sm:$0xff] }
  0x88   :  { %1236 = vmatprep.subr.bf16.mxu1 %v1616_v17  ;;  %v1916_v17 = vld [vmem:[#allocation22_spill] sm:$0xff] }
  0x8a   :  { %1215 = vmatpush3.bf16.msra.mxu0 %v1619_v18  ;;  %v1917_v18 = vld [vmem:[#allocation23_spill] sm:$0xff] }
  0x8b   :  { %1216 = vmatprep.subr.bf16.mxu0 %v1625_v20  ;;  %1237 = vmatpush3.bf16.msra.mxu1 %v1622_v19  ;;  %v1918_v19 = vld [vmem:[#allocation24_spill] sm:$0xff]  ;;  %v1919_v20 = vld [vmem:[#allocation25_spill] sm:$0xff] }
  0x8c   :  { %1238 = vmatprep.subr.bf16.mxu1 %v1628_v21  ;;  %v1920_v21 = vld [vmem:[#allocation26_spill] sm:$0xff] }
  0x8e   :  { %1217 = vmatpush3.bf16.msra.mxu0 %v1631_v25  ;;  %v1921_v25 = vld [vmem:[#allocation27_spill] sm:$0xff] }
  0x8f   :  { %1218 = vmatprep.subr.bf16.mxu0 %v1637_v27  ;;  %1239 = vmatpush3.bf16.msra.mxu1 %v1634_v26  ;;  %v1922_v26 = vld [vmem:[#allocation28_spill] sm:$0xff]  ;;  %v1923_v27 = vld [vmem:[#allocation29_spill] sm:$0xff] }
  0x90   :  { %1240 = vmatprep.subr.bf16.mxu1 %v1640_v28  ;;  %v851_v28 = vpack.c.bf16 %v829_v2, %v829_v2 }
  0x92   :  { %1219 = vmatpush3.bf16.msra.mxu0 %v1643_v31  ;;  %v853_v31 = vpack.c.bf16 %v836_v3, %v836_v3 }
  0x93   :  { %1220 = vmatprep.subr.bf16.mxu0 %v1649_v33  ;;  %1241 = vmatpush3.bf16.msra.mxu1 %v1646_v32  ;;  %v1053_v33 = vld [vmem:[%s1876_s3] ss:$0 sm:$0xff]  ;;  %s1498_s3 = smov [#allocation8]  }
  0x94   :  { %1242 = vmatprep.subr.bf16.mxu1 %v1652_v34  ;;  %s1029_s30 = sshll.u32 %s1498_s3, 4  ;;  %s1030_s30 = int_to_ptr.vmem [resolvable:$true] %s1029_s30 }
  0x95   :  { %s1440_s6 = scalar_lea.vmem %s1030_s30, 32  ;;  %p1445_p11 = scmp.lt.s32.totalorder %s1030_s30, %s1030_s30 }
  0x96   :  { %1221 = vmatpush3.bf16.msra.mxu0 %v1657_v36  ;;  %p1441_p10 = scmp.ne.s32.totalorder %s1030_s30, %s1440_s6  ;;  %p1446_p12 = scmp.lt.s32.totalorder %s1440_s6, %s1440_s6 }
  0x97   :  { %1250 = vmatprep.subr.bf16.mxu0 %v1665_v41  ;;  %1243 = vmatpush3.bf16.msra.mxu1 %v1660_v37 }
  0x98   :  { %1272 = vmatprep.subr.bf16.mxu1 %v1667_v42  ;;  %p1447_p13 = por %p1446_p12, %p1445_p11 }
  0x99   :  { %888 = vmatmul.mubr.bf16.vlgmr.msra.gmra.mrb[8].mxu0 %v847_v6 }
  0x9a   :  { %1251 = vmatpush3.bf16.msra.mxu0 %v1672_v48  ;;  %967 = vmatprep.mubr.bf16.mxu0 %v852_v7  ;;  %p1448_p0 = pnand %p1447_p13, %p1441_p10 }
  0x9b   :  { %928 = vmatmul.mubr.bf16.vlgmr.msra.gmra.mrb[8].mxu1 %v849_v8  ;;  %1252 = vmatprep.subr.bf16.mxu0 %v1674_v50 }
  0x9c   :  { %1273 = vmatpush3.bf16.msra.mxu1 %v1676_v52  ;;  %1007 = vmatprep.mubr.bf16.mxu1 %v854_v9 }
  0x9d   :  { %1274 = vmatprep.subr.bf16.mxu1 %v1678_v53 }
  0x9e   :  { %1253 = vmatpush3.bf16.msra.mxu0 %v1681_v54 }
  0x9f   :  { %1254 = vmatprep.subr.bf16.mxu0 %v1684_v55 }
  0xa0   :  { %1275 = vmatpush3.bf16.msra.mxu1 %v1687_v56 }
  0xa1   :  { %1276 = vmatprep.subr.bf16.mxu1 %v1690_v57 }
  0xa2   :  { %1255 = vmatpush3.bf16.msra.mxu0 %v1693_v58 }
  0xa3   :  { %1256 = vmatprep.subr.bf16.mxu0 %v1696_v59 }
  0xa4   :  { %1277 = vmatpush3.bf16.msra.mxu1 %v1699_v60 }
  0xa5   :  { %1278 = vmatprep.subr.bf16.mxu1 %v1702_v61 }
  0xa6   :  { %1257 = vmatpush3.bf16.msra.mxu0 %v1909_v10 }
  0xa7   :  { %1258 = vmatprep.subr.bf16.mxu0 %v1910_v11 }
  0xa8   :  { %1279 = vmatpush3.bf16.msra.mxu1 %v1911_v12 }
  0xa9   :  { %1280 = vmatprep.subr.bf16.mxu1 %v1912_v13 }
  0xaa   :  { %1259 = vmatpush3.bf16.msra.mxu0 %v1913_v14 }
  0xab   :  { %1260 = vmatprep.subr.bf16.mxu0 %v1914_v15 }
  0xac   :  { %1281 = vmatpush3.bf16.msra.mxu1 %v1915_v16 }
  0xad   :  { %1282 = vmatprep.subr.bf16.mxu1 %v1916_v17 }
  0xae   :  { %1261 = vmatpush3.bf16.msra.mxu0 %v1917_v18 }
  0xaf   :  { %1262 = vmatprep.subr.bf16.mxu0 %v1918_v19 }
  0xb0   :  { %1283 = vmatpush3.bf16.msra.mxu1 %v1919_v20 }
  0xb1   :  { %1284 = vmatprep.subr.bf16.mxu1 %v1920_v21 }
  0xb2   :  { %1263 = vmatpush3.bf16.msra.mxu0 %v1921_v25 }
  0xb3   :  { %1264 = vmatprep.subr.bf16.mxu0 %v1922_v26 }
  0xb4   :  { %1285 = vmatpush3.bf16.msra.mxu1 %v1923_v27 }
  0xb5   :  { %1286 = vmatprep.subr.bf16.mxu1 %v1750_v49 }
  0xb6   :  { %1265 = vmatpush3.bf16.msra.mxu0 %v1753_v30 }
  0xb8   :  { %1287 = vmatpush3.bf16.msra.mxu1 %v1761_v44 }
  0xb9   :  { %968 = vmatmul.mubr.bf16.vlgmr.msra.gmra.mrb[12].mxu0 %v851_v28 }
  0xbb   :  { %1008 = vmatmul.mubr.bf16.vlgmr.msra.gmra.mrb[12].mxu1 %v853_v31 }
 0x12c   :  { %v1134_v32 = vpop.f32.mrb[0].mxu0 }
 0x12d   :  { %v1135_v34 = vpop.f32.mrb[1].mxu0  ;;  %v1156_v35 = vpop.f32.mrb[0].mxu1 }
 0x12e   :  { %v1136_v36 = vadd.f32 %v1135_v34, %v1134_v32  ;;  %v1137_v37 = vpop.f32.mrb[2].mxu0  ;;  %v1157_v41 = vpop.f32.mrb[1].mxu1 }
 0x12f   :  { %v1138_v42 = vpop.f32.mrb[3].mxu0  ;;  %v1158_v50 = vadd.f32 %v1157_v41, %v1156_v35  ;;  %v1159_v52 = vpop.f32.mrb[2].mxu1 }
 0x130   :  { %v667_v48 = vadd.f32 %v1136_v36, %v1053_v33  ;;  %v1160_v53 = vpop.f32.mrb[3].mxu1 }
 0x132   :  { %v707_v54 = vadd.f32 %v1158_v50, %v667_v48 }
 0x14c   :  { %v1178_v55 = vpop.f32.mrb[4].mxu0 }
 0x14d   :  { %v1179_v56 = vpop.f32.mrb[5].mxu0  ;;  %v1200_v57 = vpop.f32.mrb[4].mxu1 }
 0x14e   :  { %v1180_v58 = vadd.f32 %v1179_v56, %v1178_v55  ;;  %v1181_v59 = vpop.f32.mrb[6].mxu0  ;;  %v1201_v60 = vpop.f32.mrb[5].mxu1 }
 0x14f   :  { %v1182_v61 = vpop.f32.mrb[7].mxu0  ;;  %v1202_v63 = vadd.f32 %v1201_v60, %v1200_v57  ;;  %v1203_v22 = vpop.f32.mrb[6].mxu1 }
 0x150   :  { %v747_v62 = vadd.f32 %v1180_v58, %v707_v54  ;;  %v1204_v23 = vpop.f32.mrb[7].mxu1 }
 0x152   :  { %v787_v30 = vadd.f32 %v1202_v63, %v747_v62 }
 0x154   :  { %v792_v39 = vmul.f32 %v787_v30, %v787_v30 }
 0x156   :  { %v794_v40 = vsel %vm793_vm0, %v792_v39, 0.0 }
 0x157   :  { %795 = vadd.xlane.f32.xlu0 %v794_v40 }
 0x16c   :  { %v1222_v43 = vpop.f32.mrb[8].mxu0 }
 0x16d   :  { %v1223_v44 = vpop.f32.mrb[9].mxu0 }
 0x16e   :  { %v1244_v45 = vpop.f32.mrb[8].mxu1  ;;  %v1224_v46 = vadd.f32 %v1223_v44, %v1222_v43  ;;  %v1225_v47 = vpop.f32.mrb[10].mxu0 }
 0x16f   :  { %v1245_v49 = vpop.f32.mrb[9].mxu1  ;;  %v1226_v51 = vpop.f32.mrb[11].mxu0 }
 0x170   :  { %v890_v38 = vadd.f32 %v1224_v46, %v1053_v33  ;;  %v1246_v29 = vadd.f32 %v1245_v49, %v1244_v45  ;;  %v1247_v24 = vpop.f32.mrb[10].mxu1 }
 0x171   :  { %v1248_v0 = vpop.f32.mrb[11].mxu1 }
 0x172   :  { %v930_v1 = vadd.f32 %v1246_v29, %v890_v38 }
 0x18c   :  { %v1266_v2 = vpop.f32.mrb[12].mxu0 }
 0x18d   :  { %v1267_v3 = vpop.f32.mrb[13].mxu0 }
 0x18e   :  { %v1288_v4 = vpop.f32.mrb[12].mxu1  ;;  %v1268_v5 = vadd.f32 %v1267_v3, %v1266_v2  ;;  %v1269_v6 = vpop.f32.mrb[14].mxu0 }
 0x18f   :  { %v1289_v7 = vpop.f32.mrb[13].mxu1  ;;  %v1270_v8 = vpop.f32.mrb[15].mxu0 }
 0x190   :  { %v970_v9 = vadd.f32 %v1268_v5, %v930_v1  ;;  %v1290_v10 = vadd.f32 %v1289_v7, %v1288_v4  ;;  %v1291_v11 = vpop.f32.mrb[14].mxu1 }
 0x191   :  { %v1292_v12 = vpop.f32.mrb[15].mxu1 }
 0x192   :  { %v1010_v13 = vadd.f32 %v1290_v10, %v970_v9 }
 0x194   :  { %v1015_v14 = vmul.f32 %v1010_v13, %v1010_v13 }
 0x196   :  { %v1016_v15 = vsel %vm793_vm0, %v1015_v14, 0.0 }
 0x197   :  { %1017 = vadd.xlane.f32.xlu0 %v1016_v15 }
 0x1e4   :  { %v796_v16 = vpop.xlane.xlu0 %795 }
 0x1e5   :  { %v797_v17 = vmax.f32 %v796_v16, 1e-24 }
 0x1e7   :  { %1370 = vrsqrt.f32 %v797_v17 }
 0x1f1   :  { %v1371_v18 = vpop.eup %1370 }
 0x1f2   :  { %v799_v19 = vmul.f32 %v1371_v18, %v787_v30 }
 0x1f4   :  { %800 = vst [vmem:[#allocation8] sm:$0x3] %v799_v19 }
 0x1f5   :  { %1451 = shalt.err (!%p1448_p0)
}
 0x1f6   :  { %s1452_s9 = scalar_lea.hbm %s1877_s4, 32 }
 0x1f7   :  { %p1453_p1 = scmp.ne.s32.totalorder %s1877_s4, %s1452_s9  ;;  %p1456_p2 = scmp.lt.u32.totalorder %s1452_s9, %s1877_s4 }
 0x1f9   :  { %p1458_p3 = pnand %p1456_p2, %p1453_p1 }
 0x1fb   :  { %1461 = shalt.err (!%p1458_p3)
}
 0x1fc   :  { %1032 = dma.vmem_to_hbm [thread:$0]  %s1030_s30, 32, %s1877_s4, [#allocation4]  }
 0x1fd   :  { %s1499_s15 = smov [#allocation9]  }
 0x1fe   :  { %s1039_s16 = sshll.u32 %s1499_s15, 4  ;;  %s1040_s16 = int_to_ptr.vmem [resolvable:$true] %s1039_s16 }
 0x1ff   :  { %s1462_s17 = scalar_lea.vmem %s1040_s16, 32  ;;  %p1467_p5 = scmp.lt.s32.totalorder %s1040_s16, %s1040_s16 }
 0x200   :  { %p1463_p4 = scmp.ne.s32.totalorder %s1040_s16, %s1462_s17  ;;  %p1468_p6 = scmp.lt.s32.totalorder %s1462_s17, %s1462_s17 }
 0x202   :  { %p1469_p7 = por %p1468_p6, %p1467_p5 }
 0x204   :  { %p1470_p8 = pnand %p1469_p7, %p1463_p4 }
 0x224   :  { %v1018_v20 = vpop.xlane.xlu0 %1017 }
 0x225   :  { %v1019_v21 = vmax.f32 %v1018_v20, 1e-24 }
 0x227   :  { %1372 = vrsqrt.f32 %v1019_v21 }
 0x231   :  { %v1373_v25 = vpop.eup %1372 }
 0x232   :  { %v1021_v26 = vmul.f32 %v1373_v25, %v1010_v13 }
 0x234   :  { %1022 = vst [vmem:[#allocation9] sm:$0x3] %v1021_v26 }
 0x235   :  { %1473 = shalt.err (!%p1470_p8)
}
 0x236   :  { %s1474_s4 = scalar_lea.hbm %s1878_s5, 32 }
 0x237   :  { %p1475_p9 = scmp.ne.s32.totalorder %s1878_s5, %s1474_s4  ;;  %p1478_p10 = scmp.lt.u32.totalorder %s1474_s4, %s1878_s5 }
 0x239   :  { %p1480_p11 = pnand %p1478_p10, %p1475_p9 }
 0x23b   :  { %1483 = shalt.err (!%p1480_p11)
}
 0x23c   :  { %1042 = dma.vmem_to_hbm [thread:$0]  %s1040_s16, 32, %s1878_s5, [#allocation10]  }
 0x23d   :  { %1488 = dma.done.wait [#allocation4], 32  }
 0x23e   :  { %1489 = vsyncadd [#allocation4], 4294967264 }
 0x23f   :  { %1490 = dma.done.wait [#allocation10], 32  }
 0x240   :  { %1491 = vsyncadd [#allocation10], 4294967264 }
 0x241   :  { %1049 = vsyncpa [#allocation3], 1 }
 0x242   :  { %1050 = vsyncpa [#allocation6], 1 }
 0x243   :  { %1051 = vsyncpa [#allocation4], 1 }
 0x244   :  { %1052 = vsyncpa [#allocation10], 1 }

</bundles_post_ra>
